<compile_context>
chip_gen: v7x
topology: tpu7x:2x2x1
jax: 0.10.0
libtpu: 0.0.40
codegen_flags: <defaults>
</compile_context>

<pallas_src>
import functools

import jax
import jax.numpy as jnp
from jax import lax
from jax.experimental import pallas as pl
from jax.experimental.pallas import tpu as pltpu


def _tpu_defaults():
    """Generation-aware scoped-VMEM cap and sequence-tile defaults.

    v5e / v6e have 128 MiB physical VMEM -> 96 MiB cap, 512-wide tiles
    (mem-bound tiled kernels measure ~63% -> ~85% of HBM roofline at 256->512).
    v7x has 64 MiB physical -> stay at the 32 MiB scoped default, 256 tiles.
    """
    try:
        vmem_cap = pltpu.get_tpu_info().vmem_capacity_bytes
    except Exception:  # unknown backend / emulator: be conservative
        vmem_cap = 0
    if vmem_cap >= 96 * 1024 * 1024:
        return 96 * 1024 * 1024, 512, 512
    return 32 * 1024 * 1024, 256, 256


_VMEM_LIMIT, _TILE_M, _TILE_Q = _tpu_defaults()


def _tile(n, cap):
    """Tile size: the full extent when small, else the cap."""
    return n if n <= cap else cap


def _heads_per_block(n_head, head_dim):
    """Smallest divisor of n_head whose lane width (h*hd) is 128-aligned."""
    for h in range(1, n_head + 1):
        if n_head % h == 0 and (h * head_dim) % 128 == 0:
            return h
    # TODO(synk): exotic tiny head dims fall back to all-heads-per-step blocks.
    return n_head


# ----------------------------------------------------------------------------
# Fused linear kernel: y = x @ W + b     (used for QKV projection and out-proj)
# Weight/bias blocks are grid-invariant -> single-buffered.
# ----------------------------------------------------------------------------
def _matmul_bias_kernel(x_ref, w_ref, b_ref, o_ref):
    y = jnp.dot(x_ref[...], w_ref[...], preferred_element_type=jnp.float32)
    o_ref[...] = (y + b_ref[...]).astype(o_ref.dtype)


def _tiled_linear(x, w, b, *, tile_m=None):
    """x: [B, T, D_in]; w: [D_in, D_out] (already transposed); b: [1, D_out] f32."""
    B, T, D_in = x.shape
    D_out = w.shape[1]
    tm = _tile(T, tile_m or _TILE_M)
    return pl.pallas_call(
        _matmul_bias_kernel,
        out_shape=jax.ShapeDtypeStruct((B, T, D_out), x.dtype),
        grid=(B, pl.cdiv(T, tm)),
        in_specs=[
            pl.BlockSpec((None, tm, D_in), lambda bb, i: (bb, i, 0)),
            # Grid-invariant weight/bias: single-buffer (saves ~10 MB VMEM for
            # the bf16 (1280, 3840) Whisper-large weight block on v7x).
            pl.BlockSpec((D_in, D_out), lambda bb, i: (0, 0),
                         pipeline_mode=pl.Buffered(1)),
            pl.BlockSpec((1, D_out), lambda bb, i: (0, 0),
                         pipeline_mode=pl.Buffered(1)),
        ],
        out_specs=pl.BlockSpec((None, tm, D_out), lambda bb, i: (bb, i, 0)),
        compiler_params=pltpu.CompilerParams(
            dimension_semantics=("parallel", "parallel"),
            vmem_limit_bytes=_VMEM_LIMIT),
    )(x, w, b)


def fused_qkv_projection(x, w_qkv, b_qkv, *, tile_m=None):
    return _tiled_linear(x, w_qkv, b_qkv, tile_m=tile_m)


def pallas_linear(x, weight, bias, *, tile_m=None):
    """x: [B,T,D_in]; weight: [D_out,D_in] (PyTorch layout); bias: [D_out]|None."""
    D_out = weight.shape[0]
    w_t = weight.T.astype(x.dtype)
    b = (jnp.zeros((1, D_out), jnp.float32) if bias is None
         else bias.reshape(1, D_out).astype(jnp.float32))
    return _tiled_linear(x, w_t, b, tile_m=tile_m)


# ----------------------------------------------------------------------------
# Attention kernel: per (batch, head-group, query-tile) block.
# q/k/v come straight from the fused [B,T,3D] activation (column blocks);
# wv is written straight into [B,T,D] layout (lane-dense >=128-wide store).
# ----------------------------------------------------------------------------
def _attn_kernel(*refs, hd, hpb, tile_q, mask_mode, with_qk, exp_dtype):
    q_ref, k_ref, v_ref = refs[0], refs[1], refs[2]
    n_in = 3
    mask_ref = None
    if mask_mode == "dense":
        mask_ref = refs[3]
        n_in = 4
    wv_ref = refs[n_in]
    qk_ref = refs[n_in + 1] if with_qk else None

    tq, t_kv = q_ref.shape[0], k_ref.shape[0]

    causal_oob = None
    if mask_mode == "causal":
        # In-kernel causal mask: no (T,T) mask DMA / resident VMEM.
        rows = (pl.program_id(2) * tile_q
                + lax.broadcasted_iota(jnp.int32, (tq, t_kv), 0))
        cols = lax.broadcasted_iota(jnp.int32, (tq, t_kv), 1)
        causal_oob = cols > rows

    wv_parts = []
    for j in range(hpb):                       # static unroll over heads in block
        sl = slice(j * hd, (j + 1) * hd)
        # Contract head dims directly; K stays in its resident (T, hd) layout
        # (MXU transposed-operand feed, no per-step XLU relayout).
        s = lax.dot_general(q_ref[:, sl], k_ref[:, sl],
                            dimension_numbers=(((1,), (1,)), ((), ())),
                            preferred_element_type=jnp.float32)    # (tq, T)
        if mask_mode == "causal":
            s = jnp.where(causal_oob, -jnp.inf, s)
            # TODO(synk): tile the key dim and pl.when-skip fully masked key
            # blocks to drop ~50% of the causal QK^T / exp work.
        elif mask_mode == "dense":
            s = s + mask_ref[...]

        if with_qk:
            qk_ref[j] = s                      # pre-softmax scores, f32

        m = jnp.max(s, axis=-1, keepdims=True)
        # bf16 exp on v6e/v7x when activations are bf16; f32 row-sum / norm.
        e = jnp.exp((s - m).astype(exp_dtype))
        denom = jnp.sum(e, axis=-1, keepdims=True, dtype=jnp.float32)
        inv = pl.reciprocal(denom, approx=True)            # EUP slot
        w = (e * inv).astype(v_ref.dtype)
        wv_parts.append(jnp.dot(w, v_ref[:, sl],
                                preferred_element_type=jnp.float32))

    wv = wv_parts[0] if hpb == 1 else jnp.concatenate(wv_parts, axis=-1)
    wv_ref[...] = wv.astype(wv_ref.dtype)                   # lane-dense store


def pallas_fused_attention(qkv, n_head, head_dim, *, mask=None, causal=False,
                           return_qk=True, tile_q=None):
    """qkv: [B, T, 3D] fused projection output (scale folded in already)."""
    B, T, three_d = qkv.shape
    D = three_d // 3
    hd = head_dim
    hpb = _heads_per_block(n_head, hd)         # heads per grid step (2 for hd=64)
    gw = hpb * hd                              # lane width of a head-group block
    n_hb = n_head // hpb
    tq = _tile(T, tile_q or _TILE_Q)
    grid = (B, n_hb, pl.cdiv(T, tq))

    inputs = [qkv, qkv, qkv]
    in_specs = [
        # q / k / v head-group columns of the fused [B,T,3D] activation.
        pl.BlockSpec((None, tq, gw), lambda b, h, i: (b, i, h)),
        pl.BlockSpec((None, T, gw), lambda b, h, i: (b, 0, n_hb + h)),
        pl.BlockSpec((None, T, gw), lambda b, h, i: (b, 0, 2 * n_hb + h)),
    ]
    if causal:
        mask_mode = "causal"
    elif mask is not None:
        mask_mode = "dense"
        inputs.append(mask[:T, :T].astype(jnp.float32))
        in_specs.append(pl.BlockSpec((tq, T), lambda b, h, i: (i, 0)))
        # TODO(synk): for large dense masks, reorder the grid head-innermost
        # (or generate the mask in-kernel) so the (tq,T) block stays resident.
    else:
        mask_mode = "none"

    exp_dtype = jnp.bfloat16 if qkv.dtype == jnp.bfloat16 else jnp.float32

    wv_spec = pl.BlockSpec((None, tq, gw), lambda b, h, i: (b, i, h))
    wv_shape = jax.ShapeDtypeStruct((B, T, D), qkv.dtype)
    if return_qk:
        out_shape = (wv_shape,
                     jax.ShapeDtypeStruct((B, n_head, T, T), jnp.float32))
        out_specs = (wv_spec,
                     pl.BlockSpec((None, hpb, tq, T),
                                  lambda b, h, i: (b, h, i, 0)))
    else:
        out_shape = wv_shape
        out_specs = wv_spec

    kernel = functools.partial(_attn_kernel, hd=hd, hpb=hpb, tile_q=tq,
                               mask_mode=mask_mode, with_qk=return_qk,
                               exp_dtype=exp_dtype)
    res = pl.pallas_call(
        kernel,
        out_shape=out_shape,
        grid=grid,
        in_specs=in_specs,
        out_specs=out_specs,
        compiler_params=pltpu.CompilerParams(
            dimension_semantics=("parallel", "parallel", "parallel"),
            vmem_limit_bytes=_VMEM_LIMIT),
    )(*inputs)

    if return_qk:
        wv, qk = res
    else:
        wv, qk = res, None
    return wv, qk


# ----------------------------------------------------------------------------
# MultiHeadAttention forward (self-attention path: xa=None, kv_cache=None)
# ----------------------------------------------------------------------------
def multi_head_attention(params, x, n_head, mask=None, causal=False,
                         return_qk=True, tile_m=None, tile_q=None):
    B, T, D = x.shape
    hd = D // n_head
    scale = float(hd) ** (-0.25)
    dtype = x.dtype

    # Fold the attention scale into the Q/K projections (free at trace time) and
    # fuse Q/K/V into a single (D, 3D) weight so x is read from HBM only once.
    # Weights stay in the activation dtype (PyTorch: weight.to(x.dtype)); bf16
    # activations are the intended production path (MXU fast path, halves the
    # single-buffered weight block that must live in VMEM on v7x).
    w_qkv = jnp.concatenate(
        [params["q_w"].T * scale, params["k_w"].T * scale, params["v_w"].T],
        axis=1).astype(dtype)
    b_qkv = jnp.concatenate(
        [params["q_b"] * scale,
         jnp.zeros((D,), jnp.float32),       # key projection has no bias
         params["v_b"]]).reshape(1, 3 * D).astype(jnp.float32)

    qkv = fused_qkv_projection(x, w_qkv, b_qkv, tile_m=tile_m)     # [B, T, 3D]

    # Attention reads q/k/v head-group columns straight from the fused layout
    # and writes wv straight into [B,T,D] -- no head split/merge transposes.
    wv, qk = pallas_fused_attention(qkv, n_head, hd, mask=mask, causal=causal,
                                    return_qk=return_qk, tile_q=tile_q)

    out = pallas_linear(wv, params["o_w"], params["o_b"], tile_m=tile_m)
    return out, qk
    # TODO(synk): cross-attention (xa) / kv_cache reuse is dispatch logic
    # outside the kernels; the same kernels apply once k/v come from xa/cache.


def init_params(key, n_state):
    ks = jax.random.split(key, 6)
    s = 0.02
    return {
        "q_w": s * jax.random.normal(ks[0], (n_state, n_state), jnp.float32),
        "q_b": s * jax.random.normal(ks[1], (n_state,), jnp.float32),
        "k_w": s * jax.random.normal(ks[2], (n_state, n_state), jnp.float32),
        "v_w": s * jax.random.normal(ks[3], (n_state, n_state), jnp.float32),
        "v_b": s * jax.random.normal(ks[4], (n_state,), jnp.float32),
        "o_w": s * jax.random.normal(ks[5], (n_state, n_state), jnp.float32),
        "o_b": jnp.zeros((n_state,), jnp.float32),
    }


def _reference(params, x, n_head, mask):
    """Pure-JAX reference mirroring the PyTorch forward, for sanity checking."""
    B, T, D = x.shape
    hd = D // n_head
    scale = float(hd) ** (-0.25)
    q = x @ params["q_w"].T + params["q_b"]
    k = x @ params["k_w"].T
    v = x @ params["v_w"].T + params["v_b"]
    qh = q.reshape(B, T, n_head, hd).transpose(0, 2, 1, 3) * scale
    kh = k.reshape(B, T, n_head, hd).transpose(0, 2, 3, 1) * scale
    vh = v.reshape(B, T, n_head, hd).transpose(0, 2, 1, 3)
    qk = jnp.einsum("bhqd,bhdk->bhqk", qh, kh)
    if mask is not None:
        qk = qk + mask[:T, :T]
    w = jax.nn.softmax(qk.astype(jnp.float32), axis=-1).astype(q.dtype)
    wv = jnp.einsum("bhqk,bhkd->bhqd", w, vh).transpose(0, 2, 1, 3).reshape(B, T, D)
    return wv @ params["o_w"].T + params["o_b"], qk


if __name__ == "__main__":
    # Whisper-like head_dim=64 (so head-pairs are 128 lanes) at tiny B/T.
    B, T, n_state, n_head = 2, 8, 256, 4

    key = jax.random.PRNGKey(0)
    k_params, k_x = jax.random.split(key)
    params = init_params(k_params, n_state)
    x = jax.random.normal(k_x, (B, T, n_state), jnp.float32)

    # Whisper-style causal mask (-inf above the diagonal) for the reference.
    mask = jnp.triu(jnp.full((T, T), -jnp.inf, jnp.float32), k=1)
    ref_out, ref_qk = _reference(params, x, n_head, mask)
    ref_out_nomask, _ = _reference(params, x, n_head, None)

    # Main path: causal mask generated in-kernel, qk returned (module parity).
    out, qk = multi_head_attention(params, x, n_head, causal=True)
    out = jax.block_until_ready(out)
    qk = jax.block_until_ready(qk)
    assert out.shape == (B, T, n_state) and qk.shape == (B, n_head, T, T)
    assert jnp.allclose(out, ref_out, atol=1e-2, rtol=1e-2)
    finite = jnp.isfinite(ref_qk)
    assert jnp.allclose(jnp.where(finite, qk, 0.0),
                        jnp.where(finite, ref_qk, 0.0), atol=1e-2, rtol=1e-2)

    # Fast path: drop the [B,H,T,T] qk writeback entirely when not needed.
    out_fast, qk_none = multi_head_attention(params, x, n_head, causal=True,
                                             return_qk=False)
    out_fast = jax.block_until_ready(out_fast)
    assert qk_none is None
    assert jnp.allclose(out_fast, ref_out, atol=1e-2, rtol=1e-2)

    # Dense-mask and no-mask code paths.
    out_d, _ = multi_head_attention(params, x, n_head, mask=mask)
    out_n, _ = multi_head_attention(params, x, n_head)
    out_d, out_n = jax.block_until_ready((out_d, out_n))
    assert jnp.allclose(out_d, ref_out, atol=1e-2, rtol=1e-2)
    assert jnp.allclose(out_n, ref_out_nomask, atol=1e-2, rtol=1e-2)

    print("KERNEL_OK")
</pallas_src>

<mosaic_0001>
module attributes {stable_mosaic.version = 11 : i64} {
  func.func @_matmul_bias_kernel(%arg0: i32, %arg1: i32, %arg2: memref<1x8x256xf32, #tpu.memory_space<vmem>>, %arg3: memref<256x768xf32, #tpu.memory_space<vmem>>, %arg4: memref<1x768xf32, #tpu.memory_space<vmem>>, %arg5: memref<1x8x768xf32, #tpu.memory_space<vmem>>) attributes {dimension_semantics = [#tpu.dimension_semantics<parallel>, #tpu.dimension_semantics<parallel>], iteration_bounds = array<i64: 2, 1>, scalar_prefetch = 0 : i64, scratch_operands = 0 : i64, tpu.core_type = #tpu.core_type<tc>, window_params = [{transform_indices = @transform_0, window_bounds = array<i64: 1, 8, 256>}, {pipeline_mode = #tpu.pipeline_mode<synchronous>, transform_indices = @transform_1, window_bounds = array<i64: 256, 768>}, {pipeline_mode = #tpu.pipeline_mode<synchronous>, transform_indices = @transform_2, window_bounds = array<i64: 1, 768>}, {transform_indices = @transform_3, window_bounds = array<i64: 1, 8, 768>}]} {
    %c0 = arith.constant 0 : index
    %c0_0 = arith.constant 0 : index
    %c0_1 = arith.constant 0 : index
    %0 = vector.load %arg2[%c0, %c0_0, %c0_1] : memref<1x8x256xf32, #tpu.memory_space<vmem>>, vector<1x8x256xf32>
    %1 = vector.shape_cast %0 : vector<1x8x256xf32> to vector<8x256xf32>
    %c0_2 = arith.constant 0 : index
    %c0_3 = arith.constant 0 : index
    %2 = vector.load %arg3[%c0_2, %c0_3] : memref<256x768xf32, #tpu.memory_space<vmem>>, vector<256x768xf32>
    %cst = arith.constant dense<0.000000e+00> : vector<8x768xf32>
    %3 = tpu.matmul %1, %2, %cst {dimension_numbers = #tpu.dot_dimension_numbers<[1], [0], [0], [1], [0, 0, 1, 1], [], []>} : vector<8x256xf32>, vector<256x768xf32>, vector<8x768xf32> -> vector<8x768xf32>
    %c0_4 = arith.constant 0 : index
    %c0_5 = arith.constant 0 : index
    %4 = vector.load %arg4[%c0_4, %c0_5] : memref<1x768xf32, #tpu.memory_space<vmem>>, vector<1x768xf32>
    %5 = vector.broadcast %4 : vector<1x768xf32> to vector<8x768xf32>
    %6 = arith.addf %3, %5 : vector<8x768xf32>
    %c0_6 = arith.constant 0 : index
    %c0_7 = arith.constant 0 : index
    %c0_8 = arith.constant 0 : index
    %7 = vector.load %arg5[%c0_6, %c0_7, %c0_8] : memref<1x8x768xf32, #tpu.memory_space<vmem>>, vector<1x8x768xf32>
    %8 = vector.shape_cast %7 : vector<1x8x768xf32> to vector<8x768xf32>
    %9 = vector.shape_cast %6 : vector<8x768xf32> to vector<1x8x768xf32>
    tpu.vector_store %arg5[%c0_6, %c0_7, %c0_8], %9 {strides = array<i32>} : memref<1x8x768xf32, #tpu.memory_space<vmem>>, vector<1x8x768xf32>,
    return
  }
  func.func @transform_0(%arg0: i32, %arg1: i32) -> (i32, i32, i32) {
    %c0_i32 = arith.constant 0 : i32
    %c0_i32_0 = arith.constant 0 : i32
    return %arg0, %arg1, %c0_i32 : i32, i32, i32
  }
  func.func @transform_1(%arg0: i32, %arg1: i32) -> (i32, i32) {
    %c0_i32 = arith.constant 0 : i32
    %c0_i32_0 = arith.constant 0 : i32
    %c0_i32_1 = arith.constant 0 : i32
    return %c0_i32, %c0_i32_0 : i32, i32
  }
  func.func @transform_2(%arg0: i32, %arg1: i32) -> (i32, i32) {
    %c0_i32 = arith.constant 0 : i32
    %c0_i32_0 = arith.constant 0 : i32
    %c0_i32_1 = arith.constant 0 : i32
    return %c0_i32, %c0_i32_0 : i32, i32
  }
  func.func @transform_3(%arg0: i32, %arg1: i32) -> (i32, i32, i32) {
    %c0_i32 = arith.constant 0 : i32
    %c0_i32_0 = arith.constant 0 : i32
    return %arg0, %arg1, %c0_i32 : i32, i32, i32
  }
}

</mosaic_0001>

<bundles_post_ra>
// kernel: tpu_custom_call.1
= control target key start
LH: loop header
LB: loop body
LE: loop exit
PB: predicated region body
PF: predicated region fallthrough
CT: control target
= control target key end

     0   :  { %8 = vsyncpa [#allocation3], 0  ;;  %s1463_s0 = inlined_call_operand.hbm [shape: f32[2,8,256], index: 0, kind: input, shape index: {}]   ;;  %s1464_s1 = inlined_call_operand.hbm [shape: f32[256,768], index: 1, kind: input, shape index: {}]   ;;  %s1465_s2 = inlined_call_operand.vmem [shape: f32[1,768], index: 2, kind: input, shape index: {}]   ;;  %s1466_s3 = inlined_call_operand.hbm [shape: f32[2,8,768], index: 3, kind: output, shape index: {}]  }
   0x1   :  { %10 = vsyncpa [#allocation3 + $0x1], 0 }
   0x2   :  { %11 = vsyncpa [#allocation6], 0 }
   0x3   :  { %12 = vsyncpa [#allocation4], 0 }
   0x4   :  { %14 = vsyncpa [#allocation4 + $0x1], 0  ;;  %s1231_s12 = smov 0   ;;  %s1233_s13 = smov 0  }
   0x5   :  { %s1235_s14 = smov 0   ;;  %s1237_s15 = smov 0  }
   0x6   :  { %s1239_s16 = smov 0   ;;  %s1241_s17 = smov 0  }
   0x7 LB: > { %s776_s18 = sadd.s32 4294967295, %s1204_s17   ;;  %s777_s19 = sadd.s32 4294967294, %s1204_s17   ;;  %s1204_s17 = sphi %s1241_s17, %s20_s17   ;;  %s1200_s16 = sphi %s1239_s16, %s1490_s16   ;;  %s1196_s15 = sphi %s1237_s15, %s1489_s15   ;;  %s1192_s14 = sphi %s1235_s14, %s1488_s14   ;;  %s1188_s13 = sphi %s1233_s13, %s1487_s13   ;;  %s1184_s12 = sphi %s1231_s12, %s1486_s12  }
   0x8   : > { %p54_p0 = scmp.ne.s32.totalorder %s1188_s13, %s1184_s12  ;;  %p1265_p1 = scmp.eq.s32.totalorder %s776_s18, 0 }
   0x9   : > { %p1269_p2 = scmp.eq.s32.totalorder %s776_s18, 1  ;;  %p128_p3 = scmp.eq.s32.totalorder %s777_s19, 1 }
   0xa   : > { %s1471_s20 = scalar_select %p1265_p1, 1, 0 }
   0xb   : > { %s1472_s21 = scalar_select %p1269_p2, 1, 0 }
   0xc   : > { %p1275_p4 = por %p1265_p1, %p54_p0  ;;  %p778_p5 = scmp.ge.s32.totalorder %s1204_s17, 1 }
   0xd   : > { %p1280_p6 = por %p128_p3, %p54_p0  ;;  %p135_p7 = scmp.lt.s32.totalorder %s1204_s17, 3 }
   0xe   : > { %s1473_s22 = scalar_select %p1275_p4, 1, 0 }
   0xf   : > { %s1474_s23 = scalar_select %p1280_p6, 1, 0 }
  0x10   : > { %p1285_p8 = pnand %p778_p5, %p135_p7  ;;  %s1206_s25 = smov [#allocation5]  }
  0x11   : > { %s147_s26 = sshll.u32 %s1206_s25, 4  ;;  %s32_s28 = sadd.s32 1, %s1200_s16  ;;  %s148_s26 = int_to_ptr.vmem [resolvable:$true] %s147_s26 }
  0x12   : > { %s1475_s24 = scalar_select %p1285_p8, 1, 0 }
  0x13   : > { %p993_p9 = pneg %p1285_p8  ;;  %s1060_s4 = scalar_lea.hbm %s1464_s1, 24576 }
  0x14   : > { %p1061_p12 = scmp.ne.s32.totalorder %s1464_s1, %s1060_s4  ;;  %p1067_p5 = scmp.lt.u32.totalorder %s1060_s4, %s1464_s1 }
  0x15   : > { %p1294_p11 = pnand %p993_p9, %p1265_p1 }
  0x17   : > { %p1062_p13 = pneg %p1294_p11 }
  0x19   : > { %p1063_p0 = pnand %p1062_p13, %p1061_p12 }
  0x1b   : > { %p1064_p3 = pneg %p1063_p0 }
  0x1d   : > { %p1069_p7 = pnand %p1067_p5, %p1064_p3 }
  0x1f   : > { %1072 = shalt.err (!%p1069_p7)
}
  0x20   : > { %s1073_s9 = scalar_lea.vmem %s148_s26, 24576  ;;  %p1081_p1 = scmp.lt.s32.totalorder %s148_s26, %s148_s26 }
  0x21   : > { %p1074_p9 = scmp.ne.s32.totalorder %s148_s26, %s1073_s9  ;;  %p1082_p4 = scmp.lt.s32.totalorder %s1073_s9, %s1073_s9 }
  0x23   : > { %p1076_p10 = pnand %p1074_p9, %p1062_p13  ;;  %p1083_p8 = por %p1082_p4, %p1081_p1 }
  0x25   : > { %p1077_p6 = pneg %p1076_p10 }
  0x27   : > { %p1084_p2 = pnand %p1083_p8, %p1077_p6 }
  0x29   : > { %1087 = shalt.err (!%p1084_p2)
}
  0x2a   : > { %s1207_s10 = smov 768   ;;  %s1208_s11 = smov 48  }
  0x2b   : > { %996 = dma.hbm_to_vmem [thread:$0]  (!%p1294_p11), %s1464_s1, 24576, %s148_s26, [#allocation6], %s1207_s10, %s1207_s10, %s1208_s11  }
  0x2c   : > { %p34_p1 = scmp.ge.s32.totalorder %s32_s28, 2  ;;  %s41_s25 = sadd.s32 1, %s1192_s14 }
  0x2d   : > { %p48_p2 = scmp.ne.s32.totalorder %s1192_s14, %s1188_s13  ;;  %p49_p4 = scmp.eq.s32.totalorder %s1204_s17, 0 }
  0x2e   : > { %s1492_s28 = smov (%p34_p1, %s32_s28), 0  ;;  %p1478_p8 = scmp.ne.s32.totalorder %s1472_s21, 0 }
  0x2f   : > { %p1321_p6 = por %p49_p4, %p48_p2  ;;  %s36_s27 = ssub.s32 %s1200_s16, %s1492_s28 }
  0x30   : > { %p1327_p10 = por %p1478_p8, %p48_p2  ;;  %p1006_p12 = scmp.lt.s32.totalorder %s1204_s17, 2 }
  0x31   : > { %p39_p11 = scmp.eq.s32.totalorder %s36_s27, 0  ;;  %s164_s26 = sand.u32 1, %s1192_s14  }
  0x32   : > { %s781_s4 = sshll.u32 %s164_s26, 4  ;;  %s790_s6 = sshll.u32 %s1200_s16, 8 }
  0x33   : > { %s1336_s5 = scalar_select %p39_p11, %s1192_s14, %s41_s25  }
  0x34   : > { %s1342_s9 = scalar_lea.hbm %s1463_s0, %s790_s6  ;;  %s168_s21 = scalar_lea.vmem [#allocation2], %s781_s4 }
  0x35   : > { %s178_s10 = sshll.u32 %s168_s21, 4  ;;  %p1348_p13 = pnand %p1006_p12, %p1321_p6  ;;  %s1344_s10 = int_to_ptr.vmem [resolvable:$true] %s178_s10 }
  0x36   : > { %s165_s18 = scalar_lea.sflag [#allocation3], %s164_s26  ;;  %s1088_s19 = scalar_lea.hbm %s1342_s9, 256 }
  0x37   : > { %p1089_p0 = scmp.ne.s32.totalorder %s1342_s9, %s1088_s19  ;;  %p1090_p3 = pneg %p1348_p13 }
  0x38   : > { %s1093_s4 = scalar_lea.hbm %s1463_s0, 512  ;;  %p1094_p9 = scmp.lt.u32.totalorder %s1342_s9, %s1463_s0 }
  0x39   : > { %p1091_p5 = pnand %p1090_p3, %p1089_p0  ;;  %p1095_p1 = scmp.lt.u32.totalorder %s1093_s4, %s1088_s19 }
  0x3a   : > { %p1097_p4 = scmp.lt.u32.totalorder %s1088_s19, %s1342_s9 }
  0x3b   : > { %p1092_p7 = pneg %p1091_p5  ;;  %p1096_p2 = por %p1095_p1, %p1094_p9 }
  0x3d   : > { %p1098_p6 = por %p1097_p4, %p1096_p2 }
  0x3f   : > { %p1099_p8 = pnand %p1098_p6, %p1092_p7 }
  0x41   : > { %1102 = shalt.err (!%p1099_p8)
}
  0x42   : > { %s1103_s26 = scalar_lea.vmem %s1344_s10, 256  ;;  %s1209_s7 = smov [#allocation2]  }
  0x43   : > { %p1104_p12 = scmp.ne.s32.totalorder %s1344_s10, %s1103_s26  ;;  %s1108_s8 = sshll.u32 %s1209_s7, 4  ;;  %s1109_s8 = int_to_ptr.vmem [resolvable:$false] %s1108_s8 }
  0x44   : > { %s1110_s21 = scalar_lea.vmem %s1109_s8, 512  ;;  %p1111_p5 = scmp.lt.s32.totalorder %s1344_s10, %s1109_s8 }
  0x45   : > { %p1106_p11 = pnand %p1104_p12, %p1090_p3  ;;  %p1112_p9 = scmp.lt.s32.totalorder %s1110_s21, %s1103_s26 }
  0x47   : > { %p1107_p0 = pneg %p1106_p11  ;;  %p1113_p1 = por %p1112_p9, %p1111_p5 }
  0x49   : > { %p1114_p2 = pnand %p1113_p1, %p1107_p0 }
  0x4b   : > { %1117 = shalt.err (!%p1114_p2)
}
  0x4c   : > { %1000 = dma.hbm_to_vmem [thread:$0]  (!%p1348_p13), %s1342_s9, 256, %s1344_s10, %s165_s18  }
  0x4d   : > { %p1481_p7 = scmp.ne.s32.totalorder %s1475_s24, 0 }
  0x4e   : > { %s1380_s19 = sand.u32 (!%p1481_p7), 1, %s1188_s13   ;;  %p1482_p3 = scmp.ne.s32.totalorder (!%p1481_p7), %s1473_s22, 0 }
  0x4f   : > { %187 = sbr.rel (%p1481_p7) target bundleno = 450 (0x1c2), region = 32  ;;  %s785_s25 = sshll.u32 (!%p1481_p7), %s1380_s19, 4 }
  0x50   : > { %s190_s27 = scalar_lea.sflag (!%p1481_p7), [#allocation3], %s1380_s19  ;;  %s1384_s4 = scalar_lea.vmem (!%p1481_p7), [#allocation2], %s785_s25 }
  0x56   : > { %1171 = dma.done.wait (%p1482_p3), %s190_s27, 256  }
  0x57   : > { %1173 = vsyncadd (%p1482_p3), %s190_s27, 4294967040  ;;  %p1483_p13 = scmp.ne.s32.totalorder %s1471_s20, 0 }
  0x59   : > { %1175 = dma.done.wait (%p1483_p13), [#allocation6], 24576  }
  0x5a   : > { %1177 = vsyncadd (%p1483_p13), [#allocation6], 4294942720  ;;  %v223_v0 = vld [vmem:[#allocation5 + $0x8] sm:$0xff]  ;;  %v229_v1 = vld [vmem:[#allocation5 + $0x38] sm:$0xff]  ;;  %s983_s24 = smul.u32 48, %s1380_s19  ;;  %s666_s26 = scalar_lea.sflag [#allocation4], %s1380_s19 }
  0x5b   : > { %v222_v2 = vld [vmem:[#allocation5] sm:$0xff]  ;;  %v791_v3 = vpack.c.bf16 %v229_v1, %v223_v0  ;;  %v228_v4 = vld [vmem:[#allocation5 + $0x30] sm:$0xff]  ;;  %v235_v5 = vld [vmem:[#allocation5 + $0x68] sm:$0xff]  ;;  %s984_s10 = smul.u32 768, %s1196_s15  ;;  %s1210_s15 = smov [#allocation7]  }
  0x5c   : > { %v241_v6 = vld [vmem:[#allocation5 + $0x98] sm:$0xff]  ;;  %v793_v7 = vpack.c.bf16 %v228_v4, %v222_v2  ;;  %v234_v9 = vld [vmem:[#allocation5 + $0x60] sm:$0xff]  ;;  %v240_v10 = vld [vmem:[#allocation5 + $0x90] sm:$0xff]  ;;  %s219_s9 = scalar_lea.vmem [#allocation7], %s983_s24  ;;  %s1122_s8 = sshll.u32 %s1210_s15, 4  ;;  %s1123_s8 = int_to_ptr.vmem [resolvable:$false] %s1122_s8 }
  0x5d   : > { %v795_v8 = vpack.c.bf16 %v241_v6, %v235_v5  ;;  %v247_v11 = vld [vmem:[#allocation5 + $0xc8] sm:$0xff]  ;;  %792 = vmatprep.subr.bf16.mxu0 %v791_v3  ;;  %v253_v12 = vld [vmem:[#allocation5 + $0xf8] sm:$0xff]  ;;  %v797_v13 = vpack.c.bf16 %v240_v10, %v234_v9  ;;  %v246_v15 = vld [vmem:[#allocation5 + $0xc0] sm:$0xff]  ;;  %s682_s11 = sshll.u32 %s219_s9, 4  ;;  %s1414_s6 = scalar_lea.hbm %s1466_s3, %s984_s10  ;;  %s1416_s11 = int_to_ptr.vmem [resolvable:$true] %s682_s11 }
  0x5e   : > { %794 = vmatpush1.bf16.msra.mxu0 %v793_v7  ;;  %v799_v14 = vpack.c.bf16 %v253_v12, %v247_v11  ;;  %v252_v16 = vld [vmem:[#allocation5 + $0xf0] sm:$0xff]  ;;  %v259_v17 = vld [vmem:[#allocation5 + $0x128] sm:$0xff]  ;;  %v265_v18 = vld [vmem:[#allocation5 + $0x158] sm:$0xff]  ;;  %s1118_s7 = scalar_lea.vmem %s1416_s11, 768  ;;  %s1124_s21 = scalar_lea.vmem %s1123_s8, 1536 }
  0x5f   : > { %796 = vmatprep.subr.bf16.mxu0 %v795_v8  ;;  %v801_v19 = vpack.c.bf16 %v252_v16, %v246_v15  ;;  %v803_v20 = vpack.c.bf16 %v265_v18, %v259_v17  ;;  %v258_v21 = vld [vmem:[#allocation5 + $0x120] sm:$0xff]  ;;  %v264_v22 = vld [vmem:[#allocation5 + $0x150] sm:$0xff]  ;;  %v271_v23 = vld [vmem:[#allocation5 + $0x188] sm:$0xff]  ;;  %p1119_p4 = scmp.ne.s32.totalorder %s1416_s11, %s1118_s7  ;;  %p1125_p12 = scmp.lt.s32.totalorder %s1416_s11, %s1123_s8 }
  0x60   : > { %v277_v24 = vld [vmem:[#allocation5 + $0x1b8] sm:$0xff]  ;;  %v805_v25 = vpack.c.bf16 %v264_v22, %v258_v21  ;;  %v270_v27 = vld [vmem:[#allocation5 + $0x180] sm:$0xff]  ;;  %v276_v28 = vld [vmem:[#allocation5 + $0x1b0] sm:$0xff]  ;;  %p1126_p11 = scmp.lt.s32.totalorder %s1124_s21, %s1118_s7 }
  0x61   : > { %v807_v26 = vpack.c.bf16 %v277_v24, %v271_v23  ;;  %v283_v29 = vld [vmem:[#allocation5 + $0x1e8] sm:$0xff]  ;;  %v289_v30 = vld [vmem:[#allocation5 + $0x218] sm:$0xff]  ;;  %v809_v31 = vpack.c.bf16 %v276_v28, %v270_v27  ;;  %v282_v33 = vld [vmem:[#allocation5 + $0x1e0] sm:$0xff]  ;;  %p1120_p6 = pnand %p1119_p4, %p1327_p10 }
  0x62   : > { %798 = vmatpush1.bf16.msra.mxu0 %v797_v13  ;;  %v811_v32 = vpack.c.bf16 %v289_v30, %v283_v29  ;;  %v288_v34 = vld [vmem:[#allocation5 + $0x210] sm:$0xff]  ;;  %v295_v35 = vld [vmem:[#allocation5 + $0x248] sm:$0xff]  ;;  %v301_v36 = vld [vmem:[#allocation5 + $0x278] sm:$0xff]  ;;  %p1127_p0 = por %p1126_p11, %p1125_p12 }
  0x63   : > { %800 = vmatprep.subr.bf16.mxu0 %v799_v14  ;;  %v813_v37 = vpack.c.bf16 %v288_v34, %v282_v33  ;;  %v294_v38 = vld [vmem:[#allocation5 + $0x240] sm:$0xff]  ;;  %v300_v39 = vld [vmem:[#allocation5 + $0x270] sm:$0xff]  ;;  %v815_v40 = vpack.c.bf16 %v301_v36, %v295_v35  ;;  %v307_v41 = vld [vmem:[#allocation5 + $0x2a8] sm:$0xff]  ;;  %p1121_p8 = pneg %p1120_p6 }
  0x64   : > { %v1395_v42 = vld [vmem:[%s1384_s4 + $0x8] sm:$0xff]  ;;  %v224_v46 = vld [vmem:[#allocation5 + $0x10] sm:$0xff]  ;;  %v230_v48 = vld [vmem:[#allocation5 + $0x40] sm:$0xff]  ;;  %v817_v49 = vpack.c.bf16 %v300_v39, %v294_v38 }
  0x65   : > { %v225_v43 = vld [vmem:[#allocation5 + $0x18] sm:$0xff]  ;;  %510 = vmatprep.mubr.f32.mxu0 %v1395_v42  ;;  %v231_v45 = vld [vmem:[#allocation5 + $0x48] sm:$0xff]  ;;  %581 = vmatprep.mubr.f32.mxu1 %v1395_v42  ;;  %v306_v50 = vld [vmem:[#allocation5 + $0x2a0] sm:$0xff]  ;;  %v857_v52 = vpack.c.bf16 %v230_v48, %v224_v46  ;;  %p1128_p5 = pnand %p1127_p0, %p1121_p8 }
  0x66   : > { %802 = vmatpush1.bf16.msra.mxu0 %v801_v19  ;;  %v313_v44 = vld [vmem:[#allocation5 + $0x2d8] sm:$0xff]  ;;  %v855_v47 = vpack.c.bf16 %v231_v45, %v225_v43  ;;  %v312_v51 = vld [vmem:[#allocation5 + $0x2d0] sm:$0xff]  ;;  %v243_v55 = vld [vmem:[#allocation5 + $0xa8] sm:$0xff] }
  0x67   : > { %804 = vmatprep.subr.bf16.mxu0 %v803_v20  ;;  %v237_v53 = vld [vmem:[#allocation5 + $0x78] sm:$0xff]  ;;  %v819_v54 = vpack.c.bf16 %v313_v44, %v307_v41  ;;  %v236_v56 = vld [vmem:[#allocation5 + $0x70] sm:$0xff]  ;;  %v242_v57 = vld [vmem:[#allocation5 + $0xa0] sm:$0xff]  ;;  %v821_v0 = vpack.c.bf16 %v312_v51, %v306_v50 }
  0x68   : > { %856 = vmatprep.subr.bf16.mxu1 %v855_v47  ;;  %v319_v58 = vld [vmem:[#allocation5 + $0x308] sm:$0xff]  ;;  %v325_v59 = vld [vmem:[#allocation5 + $0x338] sm:$0xff]  ;;  %v859_v60 = vpack.c.bf16 %v243_v55, %v237_v53  ;;  %v861_v61 = vpack.c.bf16 %v242_v57, %v236_v56  ;;  %v248_v2 = vld [vmem:[#allocation5 + $0xd0] sm:$0xff] }
  0x69   : > { %858 = vmatpush1.bf16.msra.mxu1 %v857_v52  ;;  %v249_v62 = vld [vmem:[#allocation5 + $0xd8] sm:$0xff]  ;;  %v255_v63 = vld [vmem:[#allocation5 + $0x108] sm:$0xff]  ;;  %v254_v3 = vld [vmem:[#allocation5 + $0x100] sm:$0xff]  ;;  %v823_v4 = vpack.c.bf16 %v325_v59, %v319_v58 }
  0x6a   : > { %806 = vmatpush1.bf16.msra.mxu0 %v805_v25  ;;  %860 = vmatprep.subr.bf16.mxu1 %v859_v60  ;;  %v863_v1 = vpack.c.bf16 %v255_v63, %v249_v62  ;;  %v318_v5 = vld [vmem:[#allocation5 + $0x300] sm:$0xff]  ;;  %v324_v6 = vld [vmem:[#allocation5 + $0x330] sm:$0xff]  ;;  %v331_v7 = vld [vmem:[#allocation5 + $0x368] sm:$0xff]  ;;  %v865_v9 = vpack.c.bf16 %v254_v3, %v248_v2 }
  0x6b   : > { %808 = vmatprep.subr.bf16.mxu0 %v807_v26  ;;  %v337_v8 = vld [vmem:[#allocation5 + $0x398] sm:$0xff]  ;;  %v267_v11 = vld [vmem:[#allocation5 + $0x168] sm:$0xff]  ;;  %v260_v13 = vld [vmem:[#allocation5 + $0x130] sm:$0xff]  ;;  %v825_v15 = vpack.c.bf16 %v324_v6, %v318_v5 }
  0x6c   : > { %v261_v10 = vld [vmem:[#allocation5 + $0x138] sm:$0xff]  ;;  %v266_v14 = vld [vmem:[#allocation5 + $0x160] sm:$0xff]  ;;  %v827_v17 = vpack.c.bf16 %v337_v8, %v331_v7  ;;  %v336_v19 = vld [vmem:[#allocation5 + $0x390] sm:$0xff] }
  0x6d   : > { %862 = vmatpush1.bf16.msra.mxu1 %v861_v61  ;;  %v867_v12 = vpack.c.bf16 %v267_v11, %v261_v10  ;;  %v273_v16 = vld [vmem:[#allocation5 + $0x198] sm:$0xff]  ;;  %v330_v18 = vld [vmem:[#allocation5 + $0x360] sm:$0xff]  ;;  %v279_v20 = vld [vmem:[#allocation5 + $0x1c8] sm:$0xff]  ;;  %v869_v23 = vpack.c.bf16 %v266_v14, %v260_v13 }
  0x6e   : > { %810 = vmatpush1.bf16.msra.mxu0 %v809_v31  ;;  %864 = vmatprep.subr.bf16.mxu1 %v863_v1  ;;  %v343_v21 = vld [vmem:[#allocation5 + $0x3c8] sm:$0xff]  ;;  %v349_v22 = vld [vmem:[#allocation5 + $0x3f8] sm:$0xff]  ;;  %v871_v24 = vpack.c.bf16 %v279_v20, %v273_v16  ;;  %v272_v25 = vld [vmem:[#allocation5 + $0x190] sm:$0xff]  ;;  %v829_v27 = vpack.c.bf16 %v336_v19, %v330_v18 }
  0x6f   : > { %812 = vmatprep.subr.bf16.mxu0 %v811_v32  ;;  %v278_v26 = vld [vmem:[#allocation5 + $0x1c0] sm:$0xff]  ;;  %v285_v28 = vld [vmem:[#allocation5 + $0x1f8] sm:$0xff]  ;;  %v291_v29 = vld [vmem:[#allocation5 + $0x228] sm:$0xff]  ;;  %v831_v30 = vpack.c.bf16 %v349_v22, %v343_v21 }
  0x70   : > { %v342_v31 = vld [vmem:[#allocation5 + $0x3c0] sm:$0xff]  ;;  %v348_v32 = vld [vmem:[#allocation5 + $0x3f0] sm:$0xff]  ;;  %v355_v33 = vld [vmem:[#allocation5 + $0x428] sm:$0xff]  ;;  %v873_v35 = vpack.c.bf16 %v278_v26, %v272_v25  ;;  %v875_v36 = vpack.c.bf16 %v291_v29, %v285_v28 }
  0x71   : > { %866 = vmatpush1.bf16.msra.mxu1 %v865_v9  ;;  %v361_v34 = vld [vmem:[#allocation5 + $0x458] sm:$0xff]  ;;  %v290_v38 = vld [vmem:[#allocation5 + $0x220] sm:$0xff]  ;;  %v833_v39 = vpack.c.bf16 %v348_v32, %v342_v31  ;;  %v303_v41 = vld [vmem:[#allocation5 + $0x288] sm:$0xff] }
  0x72   : > { %814 = vmatpush1.bf16.msra.mxu0 %v813_v37  ;;  %868 = vmatprep.subr.bf16.mxu1 %v867_v12  ;;  %v284_v37 = vld [vmem:[#allocation5 + $0x1f0] sm:$0xff]  ;;  %v835_v43 = vpack.c.bf16 %v361_v34, %v355_v33  ;;  %v354_v44 = vld [vmem:[#allocation5 + $0x420] sm:$0xff]  ;;  %v367_v46 = vld [vmem:[#allocation5 + $0x488] sm:$0xff] }
  0x73   : > { %816 = vmatprep.subr.bf16.mxu0 %v815_v40  ;;  %v297_v40 = vld [vmem:[#allocation5 + $0x258] sm:$0xff]  ;;  %v360_v45 = vld [vmem:[#allocation5 + $0x450] sm:$0xff]  ;;  %v877_v48 = vpack.c.bf16 %v290_v38, %v284_v37  ;;  %v302_v51 = vld [vmem:[#allocation5 + $0x280] sm:$0xff] }
  0x74   : > { %v373_v47 = vld [vmem:[#allocation5 + $0x4b8] sm:$0xff]  ;;  %v296_v50 = vld [vmem:[#allocation5 + $0x250] sm:$0xff]  ;;  %v837_v52 = vpack.c.bf16 %v360_v45, %v354_v44  ;;  %v366_v56 = vld [vmem:[#allocation5 + $0x480] sm:$0xff] }
  0x75   : > { %870 = vmatpush1.bf16.msra.mxu1 %v869_v23  ;;  %v309_v53 = vld [vmem:[#allocation5 + $0x2b8] sm:$0xff]  ;;  %v839_v55 = vpack.c.bf16 %v373_v47, %v367_v46  ;;  %v372_v57 = vld [vmem:[#allocation5 + $0x4b0] sm:$0xff]  ;;  %v379_v58 = vld [vmem:[#allocation5 + $0x4e8] sm:$0xff]  ;;  %v881_v60 = vpack.c.bf16 %v302_v51, %v296_v50 }
  0x76   : > { %818 = vmatpush1.bf16.msra.mxu0 %v817_v49  ;;  %872 = vmatprep.subr.bf16.mxu1 %v871_v24  ;;  %v879_v49 = vpack.c.bf16 %v303_v41, %v297_v40  ;;  %v385_v59 = vld [vmem:[#allocation5 + $0x518] sm:$0xff]  ;;  %v308_v62 = vld [vmem:[#allocation5 + $0x2b0] sm:$0xff]  ;;  %v314_v63 = vld [vmem:[#allocation5 + $0x2e0] sm:$0xff] }
  0x77   : > { %820 = vmatprep.subr.bf16.mxu0 %v819_v54  ;;  %v315_v54 = vld [vmem:[#allocation5 + $0x2e8] sm:$0xff]  ;;  %v321_v1 = vld [vmem:[#allocation5 + $0x318] sm:$0xff]  ;;  %v843_v3 = vpack.c.bf16 %v385_v59, %v379_v58  ;;  %v384_v5 = vld [vmem:[#allocation5 + $0x510] sm:$0xff]  ;;  %v885_v8 = vpack.c.bf16 %v314_v63, %v308_v62 }
  0x78   : > { %v883_v61 = vpack.c.bf16 %v315_v54, %v309_v53  ;;  %v327_v2 = vld [vmem:[#allocation5 + $0x348] sm:$0xff]  ;;  %v397_v7 = vld [vmem:[#allocation5 + $0x578] sm:$0xff]  ;;  %v320_v10 = vld [vmem:[#allocation5 + $0x310] sm:$0xff] }
  0x79   : > { %874 = vmatpush1.bf16.msra.mxu1 %v873_v35  ;;  %v391_v6 = vld [vmem:[#allocation5 + $0x548] sm:$0xff]  ;;  %v887_v9 = vpack.c.bf16 %v327_v2, %v321_v1  ;;  %v326_v11 = vld [vmem:[#allocation5 + $0x340] sm:$0xff]  ;;  %v333_v13 = vld [vmem:[#allocation5 + $0x378] sm:$0xff] }
  0x7a   : > { %822 = vmatpush1.bf16.msra.mxu0 %v821_v0  ;;  %876 = vmatprep.subr.bf16.mxu1 %v875_v36  ;;  %v841_v0 = vpack.c.bf16 %v372_v57, %v366_v56  ;;  %v339_v14 = vld [vmem:[#allocation5 + $0x3a8] sm:$0xff]  ;;  %v390_v16 = vld [vmem:[#allocation5 + $0x540] sm:$0xff]  ;;  %v409_v19 = vld [vmem:[#allocation5 + $0x5d8] sm:$0xff]  ;;  %v889_v20 = vpack.c.bf16 %v326_v11, %v320_v10 }
  0x7b   : > { %824 = vmatprep.subr.bf16.mxu0 %v823_v4  ;;  %v378_v4 = vld [vmem:[#allocation5 + $0x4e0] sm:$0xff]  ;;  %v403_v18 = vld [vmem:[#allocation5 + $0x5a8] sm:$0xff]  ;;  %v891_v21 = vpack.c.bf16 %v339_v14, %v333_v13  ;;  %v332_v22 = vld [vmem:[#allocation5 + $0x370] sm:$0xff] }
  0x7c   : > { %v845_v12 = vpack.c.bf16 %v384_v5, %v378_v4  ;;  %v338_v23 = vld [vmem:[#allocation5 + $0x3a0] sm:$0xff]  ;;  %v345_v25 = vld [vmem:[#allocation5 + $0x3d8] sm:$0xff]  ;;  %v351_v26 = vld [vmem:[#allocation5 + $0x408] sm:$0xff] }
  0x7d   : > { %878 = vmatpush1.bf16.msra.mxu1 %v877_v48  ;;  %v402_v28 = vld [vmem:[#allocation5 + $0x5a0] sm:$0xff]  ;;  %v408_v29 = vld [vmem:[#allocation5 + $0x5d0] sm:$0xff]  ;;  %v233_v31 = vld [vmem:[#allocation5 + $0x58] sm:$0xff]  ;;  %v893_v32 = vpack.c.bf16 %v338_v23, %v332_v22  ;;  %v895_v33 = vpack.c.bf16 %v351_v26, %v345_v25 }
  0x7e   : > { %826 = vmatpush1.bf16.msra.mxu0 %v825_v15  ;;  %880 = vmatprep.subr.bf16.mxu1 %v879_v49  ;;  %v847_v15 = vpack.c.bf16 %v397_v7, %v391_v6  ;;  %v344_v34 = vld [vmem:[#allocation5 + $0x3d0] sm:$0xff]  ;;  %v350_v35 = vld [vmem:[#allocation5 + $0x400] sm:$0xff]  ;;  %v853_v36 = vpack.c.bf16 %v408_v29, %v402_v28  ;;  %v357_v37 = vld [vmem:[#allocation5 + $0x438] sm:$0xff] }
  0x7f   : > { %828 = vmatprep.subr.bf16.mxu0 %v827_v17  ;;  %v396_v17 = vld [vmem:[#allocation5 + $0x570] sm:$0xff]  ;;  %v363_v38 = vld [vmem:[#allocation5 + $0x468] sm:$0xff]  ;;  %v226_v40 = vld [vmem:[#allocation5 + $0x20] sm:$0xff]  ;;  %v897_v45 = vpack.c.bf16 %v350_v35, %v344_v34 }
  0x80   : > { %v849_v24 = vpack.c.bf16 %v396_v17, %v390_v16  ;;  %v232_v41 = vld [vmem:[#allocation5 + $0x50] sm:$0xff]  ;;  %v245_v44 = vld [vmem:[#allocation5 + $0xb8] sm:$0xff]  ;;  %v899_v46 = vpack.c.bf16 %v363_v38, %v357_v37  ;;  %v362_v48 = vld [vmem:[#allocation5 + $0x460] sm:$0xff] }
  0x81   : > { %882 = vmatpush1.bf16.msra.mxu1 %v881_v60  ;;  %v356_v47 = vld [vmem:[#allocation5 + $0x430] sm:$0xff]  ;;  %v921_v50 = vpack.c.bf16 %v232_v41, %v226_v40  ;;  %v369_v51 = vld [vmem:[#allocation5 + $0x498] sm:$0xff]  ;;  %v238_v54 = vld [vmem:[#allocation5 + $0x80] sm:$0xff] }
  0x82   : > { %830 = vmatpush1.bf16.msra.mxu0 %v829_v27  ;;  %884 = vmatprep.subr.bf16.mxu1 %v883_v61  ;;  %v851_v27 = vpack.c.bf16 %v409_v19, %v403_v18  ;;  %v1400_v49 = vld [vmem:[%s1384_s4] sm:$0xff]  ;;  %v251_v56 = vld [vmem:[#allocation5 + $0xe8] sm:$0xff]  ;;  %v257_v57 = vld [vmem:[#allocation5 + $0x118] sm:$0xff]  ;;  %v901_v58 = vpack.c.bf16 %v362_v48, %v356_v47 }
  0x83   : > { %832 = vmatprep.subr.bf16.mxu0 %v831_v30  ;;  %v227_v30 = vld [vmem:[#allocation5 + $0x28] sm:$0xff]  ;;  %v368_v60 = vld [vmem:[#allocation5 + $0x490] sm:$0xff]  ;;  %v374_v61 = vld [vmem:[#allocation5 + $0x4c0] sm:$0xff]  ;;  %v927_v1 = vpack.c.bf16 %v257_v57, %v251_v56 }
  0x84   : > { %v381_v63 = vld [vmem:[#allocation5 + $0x4f8] sm:$0xff]  ;;  %v250_v2 = vld [vmem:[#allocation5 + $0xe0] sm:$0xff]  ;;  %v263_v4 = vld [vmem:[#allocation5 + $0x148] sm:$0xff]  ;;  %v905_v6 = vpack.c.bf16 %v374_v61, %v368_v60 }
  0x85   : > { %886 = vmatpush1.bf16.msra.mxu1 %v885_v8  ;;  %v269_v5 = vld [vmem:[#allocation5 + $0x178] sm:$0xff]  ;;  %v380_v8 = vld [vmem:[#allocation5 + $0x4f0] sm:$0xff]  ;;  %v262_v14 = vld [vmem:[#allocation5 + $0x140] sm:$0xff] }
  0x86   : > { %834 = vmatpush1.bf16.msra.mxu0 %v833_v39  ;;  %888 = vmatprep.subr.bf16.mxu1 %v887_v9  ;;  %v919_v39 = vpack.c.bf16 %v233_v31, %v227_v30  ;;  %v386_v9 = vld [vmem:[#allocation5 + $0x520] sm:$0xff]  ;;  %v393_v11 = vld [vmem:[#allocation5 + $0x558] sm:$0xff]  ;;  %v931_v13 = vpack.c.bf16 %v269_v5, %v263_v4  ;;  %v392_v19 = vld [vmem:[#allocation5 + $0x550] sm:$0xff] }
  0x87   : > { %836 = vmatprep.subr.bf16.mxu0 %v835_v43  ;;  %v239_v43 = vld [vmem:[#allocation5 + $0x88] sm:$0xff]  ;;  %v281_v16 = vld [vmem:[#allocation5 + $0x1d8] sm:$0xff]  ;;  %v909_v17 = vpack.c.bf16 %v386_v9, %v380_v8  ;;  %v274_v25 = vld [vmem:[#allocation5 + $0x1a0] sm:$0xff] }
  0x88   : > { %v923_v53 = vpack.c.bf16 %v245_v44, %v239_v43  ;;  %v405_v22 = vld [vmem:[#allocation5 + $0x5b8] sm:$0xff]  ;;  %v411_v23 = vld [vmem:[#allocation5 + $0x5e8] sm:$0xff]  ;;  %v280_v26 = vld [vmem:[#allocation5 + $0x1d0] sm:$0xff] }
  0x89   : > { %890 = vmatpush1.bf16.msra.mxu1 %v889_v20  ;;  %v398_v20 = vld [vmem:[#allocation5 + $0x580] sm:$0xff]  ;;  %v293_v28 = vld [vmem:[#allocation5 + $0x238] sm:$0xff]  ;;  %v915_v30 = vpack.c.bf16 %v411_v23, %v405_v22  ;;  %v404_v31 = vld [vmem:[#allocation5 + $0x5b0] sm:$0xff] }
  0x8a   : > { %838 = vmatpush1.bf16.msra.mxu0 %v837_v52  ;;  %892 = vmatprep.subr.bf16.mxu1 %v891_v21  ;;  %v375_v52 = vld [vmem:[#allocation5 + $0x4c8] sm:$0xff]  ;;  %v913_v29 = vpack.c.bf16 %v398_v20, %v392_v19  ;;  %v286_v35 = vld [vmem:[#allocation5 + $0x200] sm:$0xff]  ;;  %v305_v38 = vld [vmem:[#allocation5 + $0x298] sm:$0xff] }
  0x8b   : > { %840 = vmatprep.subr.bf16.mxu0 %v839_v55  ;;  %v244_v55 = vld [vmem:[#allocation5 + $0xb0] sm:$0xff]  ;;  %v903_v59 = vpack.c.bf16 %v375_v52, %v369_v51  ;;  %v299_v37 = vld [vmem:[#allocation5 + $0x268] sm:$0xff]  ;;  %v298_v43 = vld [vmem:[#allocation5 + $0x260] sm:$0xff] }
  0x8c   : > { %v925_v62 = vpack.c.bf16 %v244_v55, %v238_v54  ;;  %v943_v41 = vpack.c.bf16 %v305_v38, %v299_v37  ;;  %v304_v44 = vld [vmem:[#allocation5 + $0x290] sm:$0xff]  ;;  %v323_v52 = vld [vmem:[#allocation5 + $0x328] sm:$0xff]  ;;  %v322_v56 = vld [vmem:[#allocation5 + $0x320] sm:$0xff] }
  0x8d   : > { %894 = vmatpush1.bf16.msra.mxu1 %v893_v32  ;;  %v410_v32 = vld [vmem:[#allocation5 + $0x5e0] sm:$0xff]  ;;  %v945_v47 = vpack.c.bf16 %v304_v44, %v298_v43  ;;  %v316_v51 = vld [vmem:[#allocation5 + $0x2f0] sm:$0xff]  ;;  %v395_v23 = vld [vmem:[#allocation5 + $0x568] sm:$0xff] }
  0x8e   : > { %842 = vmatpush1.bf16.msra.mxu0 %v841_v0  ;;  %896 = vmatprep.subr.bf16.mxu1 %v895_v33  ;;  %v387_v0 = vld [vmem:[#allocation5 + $0x528] sm:$0xff]  ;;  %v937_v33 = vpack.c.bf16 %v280_v26, %v274_v25  ;;  %v328_v57 = vld [vmem:[#allocation5 + $0x350] sm:$0xff]  ;;  %v346_v4 = vld [vmem:[#allocation5 + $0x3e0] sm:$0xff] }
  0x8f   : > { %844 = vmatprep.subr.bf16.mxu0 %v843_v3  ;;  %v256_v3 = vld [vmem:[#allocation5 + $0x110] sm:$0xff]  ;;  %v907_v7 = vpack.c.bf16 %v387_v0, %v381_v63  ;;  %v953_v60 = vpack.c.bf16 %v328_v57, %v322_v56  ;;  %v347_v0 = vld [vmem:[#allocation5 + $0x3e8] sm:$0xff] }
  0x90   : > { %v929_v10 = vpack.c.bf16 %v256_v3, %v250_v2  ;;  %v340_v63 = vld [vmem:[#allocation5 + $0x3b0] sm:$0xff] }
  0x91   : > { %898 = vmatpush1.bf16.msra.mxu1 %v897_v45  ;;  %v311_v45 = vld [vmem:[#allocation5 + $0x2c8] sm:$0xff]  ;;  %v352_v5 = vld [vmem:[#allocation5 + $0x410] sm:$0xff] }
  0x92   : > { %846 = vmatpush1.bf16.msra.mxu0 %v845_v12  ;;  %900 = vmatprep.subr.bf16.mxu1 %v899_v46  ;;  %v399_v12 = vld [vmem:[#allocation5 + $0x588] sm:$0xff]  ;;  %v317_v46 = vld [vmem:[#allocation5 + $0x2f8] sm:$0xff]  ;;  %v961_v8 = vpack.c.bf16 %v352_v5, %v346_v4  ;;  %v388_v22 = vld [vmem:[#allocation5 + $0x530] sm:$0xff] }
  0x93   : > { %848 = vmatprep.subr.bf16.mxu0 %v847_v15  ;;  %v275_v15 = vld [vmem:[#allocation5 + $0x1a8] sm:$0xff]  ;;  %v911_v18 = vpack.c.bf16 %v399_v12, %v393_v11  ;;  %v947_v48 = vpack.c.bf16 %v317_v46, %v311_v45  ;;  %v364_v11 = vld [vmem:[#allocation5 + $0x470] sm:$0xff] }
  0x94   : > { %v371_v12 = vld [vmem:[#allocation5 + $0x4a8] sm:$0xff] }
  0x95   : > { %902 = vmatpush1.bf16.msra.mxu1 %v901_v58  ;;  %v335_v58 = vld [vmem:[#allocation5 + $0x388] sm:$0xff] }
  0x96   : > { %850 = vmatpush1.bf16.msra.mxu0 %v849_v24  ;;  %904 = vmatprep.subr.bf16.mxu1 %v903_v59  ;;  %v935_v24 = vpack.c.bf16 %v281_v16, %v275_v15  ;;  %v341_v59 = vld [vmem:[#allocation5 + $0x3b8] sm:$0xff]  ;;  %v370_v15 = vld [vmem:[#allocation5 + $0x4a0] sm:$0xff]  ;;  %v376_v16 = vld [vmem:[#allocation5 + $0x4d0] sm:$0xff] }
  0x97   : > { %852 = vmatprep.subr.bf16.mxu0 %v851_v27  ;;  %v287_v27 = vld [vmem:[#allocation5 + $0x208] sm:$0xff]  ;;  %v955_v61 = vpack.c.bf16 %v341_v59, %v335_v58  ;;  %v969_v19 = vpack.c.bf16 %v376_v16, %v370_v15 }
  0x98   : > { %v939_v34 = vpack.c.bf16 %v293_v28, %v287_v27  ;;  %v394_v27 = vld [vmem:[#allocation5 + $0x560] sm:$0xff]  ;;  %v400_v28 = vld [vmem:[#allocation5 + $0x590] sm:$0xff] }
  0x99   : > { %906 = vmatpush1.bf16.msra.mxu1 %v905_v6  ;;  %v359_v6 = vld [vmem:[#allocation5 + $0x448] sm:$0xff] }
  0x9a   : > { %854 = vmatpush1.bf16.msra.mxu0 %v853_v36  ;;  %908 = vmatprep.subr.bf16.mxu1 %v907_v7  ;;  %v292_v36 = vld [vmem:[#allocation5 + $0x230] sm:$0xff]  ;;  %v365_v7 = vld [vmem:[#allocation5 + $0x478] sm:$0xff] }
  0x9b   : > { %920 = vmatprep.subr.bf16.mxu0 %v919_v39  ;;  %v917_v39 = vpack.c.bf16 %v410_v32, %v404_v31  ;;  %v941_v40 = vpack.c.bf16 %v292_v36, %v286_v35  ;;  %v963_v9 = vpack.c.bf16 %v365_v7, %v359_v6  ;;  %v977_v31 = vpack.c.bf16 %v400_v28, %v394_v27 }
  0x9c   : > { %v416_v36 = vlaneseq }
  0x9d   : > { %511 = vmatmul.mubr.f32.vlgmr.msra.gmra.mrb[0].mxu0 %v1400_v49  ;;  %910 = vmatpush1.bf16.msra.mxu1 %v909_v17  ;;  %v383_v17 = vld [vmem:[#allocation5 + $0x508] sm:$0xff] }
  0x9e   : > { %922 = vmatpush1.bf16.msra.mxu0 %v921_v50  ;;  %652 = vmatprep.mubr.f32.mxu0 %v1395_v42  ;;  %v268_v42 = vld [vmem:[#allocation5 + $0x170] sm:$0xff]  ;;  %v310_v50 = vld [vmem:[#allocation5 + $0x2c0] sm:$0xff]  ;;  %v417_v37 = vshrl.u32 %v416_v36, 7 }
  0x9f   : > { %924 = vmatprep.subr.bf16.mxu0 %v923_v53  ;;  %v933_v21 = vpack.c.bf16 %v268_v42, %v262_v14  ;;  %912 = vmatprep.subr.bf16.mxu1 %v911_v18  ;;  %v329_v53 = vld [vmem:[#allocation5 + $0x358] sm:$0xff]  ;;  %v949_v54 = vpack.c.bf16 %v316_v51, %v310_v50 }
  0xa0   : > { %v951_v55 = vpack.c.bf16 %v329_v53, %v323_v52  ;;  %v389_v18 = vld [vmem:[#allocation5 + $0x538] sm:$0xff]  ;;  %v418_v38 = vsub.s32 0, %v417_v37  ;;  %v434_v56 = vsub.s32 4, %v417_v37  ;;  %v438_v57 = vsub.s32 5, %v417_v37 }
  0xa1   : > { %914 = vmatpush1.bf16.msra.mxu1 %v913_v29  ;;  %v971_v20 = vpack.c.bf16 %v389_v18, %v383_v17  ;;  %v407_v29 = vld [vmem:[#allocation5 + $0x5c8] sm:$0xff] }
  0xa2   : > { %926 = vmatpush1.bf16.msra.mxu0 %v925_v62  ;;  %916 = vmatprep.subr.bf16.mxu1 %v915_v30  ;;  %v334_v62 = vld [vmem:[#allocation5 + $0x380] sm:$0xff]  ;;  %v413_v30 = vld [vmem:[#allocation5 + $0x5f8] sm:$0xff] }
  0xa3   : > { %928 = vmatprep.subr.bf16.mxu0 %v927_v1  ;;  %v353_v1 = vld [vmem:[#allocation5 + $0x418] sm:$0xff]  ;;  %v957_v2 = vpack.c.bf16 %v340_v63, %v334_v62  ;;  %v979_v32 = vpack.c.bf16 %v413_v30, %v407_v29 }
  0xa4   : > { %v959_v3 = vpack.c.bf16 %v353_v1, %v347_v0 }
  0xa5   : > { %918 = vmatpush1.bf16.msra.mxu1 %v917_v39  ;;  %v414_v39 = vld [vmem:[%s1465_s2] sm:$0x3f] }
  0xa6   : > { %930 = vmatpush1.bf16.msra.mxu0 %v929_v10  ;;  %v358_v10 = vld [vmem:[#allocation5 + $0x440] sm:$0xff]  ;;  %v435_v58 = vrot.slane %v414_v39, %v434_v56  ;;  %v439_v59 = vrot.slane %v414_v39, %v438_v57 }
  0xa7   : > { %932 = vmatprep.subr.bf16.mxu0 %v931_v13  ;;  %v377_v13 = vld [vmem:[#allocation5 + $0x4d8] sm:$0xff]  ;;  %v965_v14 = vpack.c.bf16 %v364_v11, %v358_v10 }
  0xa8   : > { %582 = vmatmul.mubr.f32.vlgmr.msra.gmra.mrb[0].mxu1 %v1400_v49  ;;  %v967_v42 = vpack.c.bf16 %v377_v13, %v371_v12 }
  0xaa   : > { %934 = vmatpush1.bf16.msra.mxu0 %v933_v21  ;;  %v382_v21 = vld [vmem:[#allocation5 + $0x500] sm:$0xff] }
  0xab   : > { %936 = vmatprep.subr.bf16.mxu0 %v935_v24  ;;  %v401_v24 = vld [vmem:[#allocation5 + $0x598] sm:$0xff]  ;;  %v973_v25 = vpack.c.bf16 %v388_v22, %v382_v21 }
  0xac   : > { %v975_v26 = vpack.c.bf16 %v401_v24, %v395_v23 }
  0xae   : > { %938 = vmatpush1.bf16.msra.mxu0 %v937_v33  ;;  %v406_v33 = vld [vmem:[#allocation5 + $0x5c0] sm:$0xff] }
  0xaf   : > { %940 = vmatprep.subr.bf16.mxu0 %v939_v34  ;;  %v412_v34 = vld [vmem:[#allocation5 + $0x5f0] sm:$0xff] }
  0xb0   : > { %v981_v35 = vpack.c.bf16 %v412_v34, %v406_v33 }
  0xb2   : > { %942 = vmatpush1.bf16.msra.mxu0 %v941_v40  ;;  %v422_v40 = vsub.s32 1, %v417_v37 }
  0xb3   : > { %944 = vmatprep.subr.bf16.mxu0 %v943_v41  ;;  %v419_v41 = vrot.slane %v414_v39, %v418_v38 }
  0xb4   : > { %v423_v43 = vrot.slane %v414_v39, %v422_v40 }
  0xb6   : > { %946 = vmatpush1.bf16.msra.mxu0 %v945_v47 }
  0xb7   : > { %948 = vmatprep.subr.bf16.mxu0 %v947_v48  ;;  %v430_v48 = vsub.s32 3, %v417_v37 }
  0xb9   : > { %v431_v51 = vrot.slane %v414_v39, %v430_v48 }
  0xba   : > { %950 = vmatpush1.bf16.msra.mxu0 %v949_v54 }
  0xbb   : > { %952 = vmatprep.subr.bf16.mxu0 %v951_v55 }
  0xbe   : > { %954 = vmatpush1.bf16.msra.mxu0 %v953_v60 }
  0xbf   : > { %956 = vmatprep.subr.bf16.mxu0 %v955_v61 }
  0xc2   : > { %958 = vmatpush1.bf16.msra.mxu0 %v957_v2 }
  0xc3   : > { %960 = vmatprep.subr.bf16.mxu0 %v959_v3 }
  0xc6   : > { %962 = vmatpush1.bf16.msra.mxu0 %v961_v8 }
  0xc7   : > { %964 = vmatprep.subr.bf16.mxu0 %v963_v9 }
  0xca   : > { %966 = vmatpush1.bf16.msra.mxu0 %v965_v14 }
  0xcb   : > { %968 = vmatprep.subr.bf16.mxu0 %v967_v42 }
  0xce   : > { %970 = vmatpush1.bf16.msra.mxu0 %v969_v19 }
  0xcf   : > { %972 = vmatprep.subr.bf16.mxu0 %v971_v20 }
  0xd2   : > { %974 = vmatpush1.bf16.msra.mxu0 %v973_v25 }
  0xd3   : > { %976 = vmatprep.subr.bf16.mxu0 %v975_v26 }
  0xd6   : > { %978 = vmatpush1.bf16.msra.mxu0 %v977_v31 }
  0xd7   : > { %980 = vmatprep.subr.bf16.mxu0 %v979_v32 }
  0xda   : > { %982 = vmatpush1.bf16.msra.mxu0 %v981_v35 }
  0xdd   : > { %653 = vmatmul.mubr.f32.vlgmr.msra.gmra.mrb[2].mxu0 %v1400_v49  ;;  %v426_v49 = vsub.s32 2, %v417_v37 }
  0xdf   : > { %v427_v50 = vrot.slane %v414_v39, %v426_v49 }
 0x170   : > { %v512_v44 = vpop.f32.mrb[0].mxu0 }
 0x171   : > { %v513_v45 = vadd.f32 %v512_v44, %v419_v41  ;;  %v514_v46 = vpop.f32.mrb[1].mxu0 }
 0x172   : > { %v515_v47 = vadd.f32 %v514_v46, %v423_v43 }
 0x173   : > { %659 = vst [vmem:[%s219_s9] sm:$0xff] %v513_v45 }
 0x174   : > { %660 = vst [vmem:[%s219_s9 + $0x8] sm:$0xff] %v515_v47 }
 0x17b   : > { %v583_v52 = vpop.f32.mrb[0].mxu1 }
 0x17c   : > { %v584_v53 = vadd.f32 %v583_v52, %v427_v50  ;;  %v585_v54 = vpop.f32.mrb[1].mxu1 }
 0x17d   : > { %v586_v55 = vadd.f32 %v585_v54, %v431_v51 }
 0x17e   : > { %661 = vst [vmem:[%s219_s9 + $0x10] sm:$0xff] %v584_v53 }
 0x17f   : > { %662 = vst [vmem:[%s219_s9 + $0x18] sm:$0xff] %v586_v55 }
 0x1b0   : > { %v654_v60 = vpop.f32.mrb[2].mxu0 }
 0x1b1   : > { %v655_v61 = vadd.f32 %v654_v60, %v435_v58  ;;  %v656_v62 = vpop.f32.mrb[3].mxu0 }
 0x1b2   : > { %v657_v63 = vadd.f32 %v656_v62, %v439_v59 }
 0x1b3   : > { %663 = vst [vmem:[%s219_s9 + $0x20] sm:$0xff] %v655_v61 }
 0x1b4   : > { %664 = vst [vmem:[%s219_s9 + $0x28] sm:$0xff] %v657_v63 }
 0x1b5   : > { %1131 = shalt.err (!%p1128_p5)
}
 0x1b6   : > { %s1132_s19 = scalar_lea.hbm %s1414_s6, 768  ;;  %s1136_s4 = scalar_lea.hbm %s1466_s3, 1536 }
 0x1b7   : > { %p1133_p9 = scmp.ne.s32.totalorder %s1414_s6, %s1132_s19  ;;  %p1137_p7 = scmp.lt.u32.totalorder %s1414_s6, %s1466_s3 }
 0x1b8   : > { %p1138_p3 = scmp.lt.u32.totalorder %s1136_s4, %s1132_s19  ;;  %p1140_p4 = scmp.lt.u32.totalorder %s1132_s19, %s1414_s6 }
 0x1b9   : > { %p1134_p1 = pnand %p1133_p9, %p1327_p10 }
 0x1ba   : > { %p1139_p13 = por %p1138_p3, %p1137_p7 }
 0x1bb   : > { %p1135_p2 = pneg %p1134_p1 }
 0x1bc   : > { %p1141_p6 = por %p1140_p4, %p1139_p13 }
 0x1be   : > { %p1142_p8 = pnand %p1141_p6, %p1135_p2 }
 0x1c0   : > { %1145 = shalt.err (!%p1142_p8)
}
 0x1c1   : > { %991 = dma.vmem_to_hbm [thread:$0]  (%p1327_p10), %s1416_s11, 768, %s1414_s6, %s666_s26  }
 0x1c2 PF: > { %s694_s24 = sand.u32 1, %s1184_s12   ;;  %p1484_p12 = scmp.ne.s32.totalorder %s1474_s23, 0 }
 0x1c3   : > { %p1485_p11 = scmp.ge.s32.totalorder %s1204_s17, 2  ;;  %s695_s9 = scalar_lea.sflag [#allocation4], %s694_s24 }
 0x1c5   : > { %p1002_p0 = pnand %p1485_p11, %p1484_p12 }
 0x1c7   : > { %1179 = dma.done.wait (!%p1002_p0), %s695_s9, 768  }
 0x1c8   : > { %1181 = vsyncadd (!%p1002_p0), %s695_s9, 4294966528  ;;  %s20_s17 = sadd.s32 1, %s1204_s17   ;;  %s1486_s12 = smov %s1188_s13 }
 0x1c9   : > { %p17_p5 = scmp.ge.s32.totalorder %s20_s17, 4   ;;  %s1487_s13 = smov %s1192_s14 }
 0x1ca   : > { %s1488_s14 = smov %s1336_s5  ;;  %s1489_s15 = smov %s1200_s16 }
 0x1cb   : > { %s1490_s16 = smov %s1492_s28  ;;  %19 = sbr.rel (!%p17_p5) target bundleno = 7 (0x7), region = 81 }
 0x1d2   :  { %700 = vsyncpa [#allocation3], 1 }
 0x1d3   :  { %702 = vsyncpa [#allocation3 + $0x1], 1 }
 0x1d4   :  { %703 = vsyncpa [#allocation6], 1 }
 0x1d5   :  { %704 = vsyncpa [#allocation4], 1 }
 0x1d6   :  { %706 = vsyncpa [#allocation4 + $0x1], 1 }

</bundles_post_ra>
